<compile_context>
chip_gen: v6e
topology: v6e:2x2x1
jax: 0.10.0
libtpu: 0.0.40
codegen_flags: <defaults>
</compile_context>

<pallas_src>
import functools

import jax
import jax.numpy as jnp
from jax.experimental import pallas as pl
from jax.experimental.pallas import tpu as pltpu

EPS = 1e-5   # torch.nn.LayerNorm default
LANE = 128


# --------------------------------------------------------------------------
# Small helpers
# --------------------------------------------------------------------------
def _round_up(v, m):
    return (v + m - 1) // m * m


def _cdiv(a, b):
    return (a + b - 1) // b


def _vmem_capacity_bytes():
    """Per-TensorCore VMEM capacity; conservative (v7x) fallback if unknown."""
    try:
        return int(pltpu.get_tpu_info().vmem_capacity_bytes)
    except Exception:
        return 64 * 1024 * 1024


def _ln(h, gamma, beta, n_valid):
    """LayerNorm over the last axis.  Only the first `n_valid` columns are
    real; padded columns of `h` are exactly zero and padded gamma/beta are
    zero, so the padded output columns come out zero as well."""
    n_total = h.shape[-1]
    inv_n = 1.0 / n_valid
    mu = jnp.sum(h, axis=-1, keepdims=True) * inv_n
    centered = h - mu                                   # reused for var + norm
    if n_valid != n_total:
        mask = jax.lax.broadcasted_iota(jnp.int32, h.shape, h.ndim - 1) < n_valid
        csq = jnp.where(mask, centered, 0.0)
    else:
        csq = centered
    var = jnp.sum(csq * csq, axis=-1, keepdims=True) * inv_n
    return centered * jax.lax.rsqrt(var + EPS) * gamma + beta


# --------------------------------------------------------------------------
# Kernels
# --------------------------------------------------------------------------
def _ffn_fused_kernel(x_ref, w1_ref, b1_ref, g1_ref, be1_ref,
                      w2_ref, b2_ref, g2_ref, be2_ref, o_ref,
                      *, h_valid, c_valid):
    """Fully fused FFN: both weights resident in VMEM, rows streamed."""
    x = x_ref[...].astype(jnp.float32)                  # residual copy (f32)

    # fc1 (MXU, f32 accumulation) + LayerNorm(hidden)
    h = jnp.dot(x_ref[...].astype(w1_ref.dtype), w1_ref[...],
                preferred_element_type=jnp.float32) + b1_ref[...]
    h = _ln(h, g1_ref[...], be1_ref[...], h_valid)

    # SiLU
    h = h * jax.nn.sigmoid(h)

    # fc2 + LayerNorm(out)
    y = jnp.dot(h.astype(w2_ref.dtype), w2_ref[...],
                preferred_element_type=jnp.float32) + b2_ref[...]
    y = _ln(y, g2_ref[...], be2_ref[...], c_valid)

    # drop_path = Identity (drop_path=0.0); residual add.
    o_ref[...] = (y + x).astype(o_ref.dtype)


def _fc1_stream_kernel(x_ref, w1_ref, b1_ref, h_ref, mu_ref, rstd_ref,
                       sum_sc, sq_sc, *, h_valid):
    """Streaming pass 1: fc1 over H-chunks + online LayerNorm statistics."""
    k = pl.program_id(1)

    @pl.when(k == 0)
    def _():
        sum_sc[...] = jnp.zeros_like(sum_sc)
        sq_sc[...] = jnp.zeros_like(sq_sc)

    h = jnp.dot(x_ref[...].astype(w1_ref.dtype), w1_ref[...],
                preferred_element_type=jnp.float32) + b1_ref[...]
    # Padded hidden columns are exactly zero (zero weight cols / zero bias),
    # so they contribute nothing to the sums; divide by the true H below.
    sum_sc[...] += jnp.sum(h, axis=-1, keepdims=True)
    sq_sc[...] += jnp.sum(h * h, axis=-1, keepdims=True)
    h_ref[...] = h.astype(h_ref.dtype)

    @pl.when(k == pl.num_programs(1) - 1)
    def _():
        inv_n = 1.0 / h_valid
        mu = sum_sc[...] * inv_n
        var = sq_sc[...] * inv_n - mu * mu
        mu_ref[...] = mu
        rstd_ref[...] = jax.lax.rsqrt(var + EPS)


def _fc2_stream_kernel(h_ref, mu_ref, rstd_ref, g1_ref, be1_ref,
                       w2_ref, b2_ref, g2_ref, be2_ref, x_ref, o_ref,
                       acc_sc, *, c_valid):
    """Streaming pass 2: LN1 + SiLU per H-chunk, fc2 accumulation over chunks,
    then LN2 + residual on the last chunk."""
    k = pl.program_id(1)

    @pl.when(k == 0)
    def _():
        acc_sc[...] = jnp.zeros_like(acc_sc)

    h = (h_ref[...].astype(jnp.float32) - mu_ref[...]) * rstd_ref[...]
    h = h * g1_ref[...] + be1_ref[...]
    h = h * jax.nn.sigmoid(h)                            # SiLU
    acc_sc[...] += jnp.dot(h.astype(w2_ref.dtype), w2_ref[...],
                           preferred_element_type=jnp.float32)

    @pl.when(k == pl.num_programs(1) - 1)
    def _():
        y = acc_sc[...] + b2_ref[...]
        y = _ln(y, g2_ref[...], be2_ref[...], c_valid)
        o_ref[...] = (y + x_ref[...].astype(jnp.float32)).astype(o_ref.dtype)


# --------------------------------------------------------------------------
# Planners
# --------------------------------------------------------------------------
def _fused_vmem_bytes(tm, cp, hp, x_it, w_it):
    weights = 2 * cp * hp * w_it                    # w1 + w2, single-buffered
    params = 3 * (hp + cp) * 4                      # biases + LN params (f32)
    io = 2 * 2 * tm * cp * x_it                     # double-buffered x / out
    interm = 3 * tm * hp * 4 + 2 * tm * cp * 4      # conservative f32 interms
    return weights + params + io + interm


def _stream_vmem_bytes(tm, cp, hp, th, x_it, w_it, h_it):
    w_tile = 2 * cp * th * w_it                     # double-buffered weight chunk
    io = 2 * 2 * tm * cp * x_it + 2 * 2 * tm * th * h_it
    acc = tm * cp * 4
    interm = 3 * tm * th * 4
    params = 3 * (hp + cp) * 4
    return w_tile + io + acc + interm + params


def _pick_row_tiling(M, tm_max, fits):
    """Balanced row tiles: minimize padding waste, keep >= 2 programs when
    possible (v7x has 2 TensorCores), shrink until the VMEM estimate fits."""
    num_tiles = max(1, _cdiv(M, tm_max))
    if num_tiles == 1 and M > 8:
        num_tiles = 2
    tm = max(8, _round_up(_cdiv(M, num_tiles), 8))
    while tm > 8 and not fits(tm):
        num_tiles += max(1, num_tiles)              # ~halve the tile, rebalance
        tm = max(8, _round_up(_cdiv(M, num_tiles), 8))
    return tm, num_tiles


# --------------------------------------------------------------------------
# Wrapper
# --------------------------------------------------------------------------
def ffn_pallas(x2d, w1, b1, g1, be1, w2, b2, g2, be2, *,
               tm_max=None, force_stream=False):
    M, C = x2d.shape
    H = w1.shape[1]
    assert w2.shape[1] == C, "residual requires out_features == in_features"

    x_it = x2d.dtype.itemsize
    w_it = w1.dtype.itemsize

    capacity = _vmem_capacity_bytes()
    budget = int(0.70 * capacity)                   # planner budget per core
    vmem_limit = int(0.87 * capacity)               # scoped-VMEM limit
    if tm_max is None:
        tm_max = 1024 if capacity >= 96 * 1024 * 1024 else 512

    # ---- Lane-dense feature axes: pad C and H to multiples of 128 ----------
    cp = _round_up(max(C, LANE), LANE)
    hp = _round_up(max(H, LANE), LANE)
    x2d = jnp.pad(x2d, ((0, 0), (0, cp - C)))
    w1 = jnp.pad(w1, ((0, cp - C), (0, hp - H)))
    w2 = jnp.pad(w2, ((0, hp - H), (0, cp - C)))
    b1 = jnp.pad(b1, ((0, 0), (0, hp - H)))
    g1 = jnp.pad(g1, ((0, 0), (0, hp - H)))
    be1 = jnp.pad(be1, ((0, 0), (0, hp - H)))
    b2 = jnp.pad(b2, ((0, 0), (0, cp - C)))
    g2 = jnp.pad(g2, ((0, 0), (0, cp - C)))
    be2 = jnp.pad(be2, ((0, 0), (0, cp - C)))

    resident_w_bytes = 2 * cp * hp * w_it
    use_stream = force_stream or resident_w_bytes > int(0.55 * budget)

    # ======================= Fused path (weights resident) ==================
    if not use_stream:
        fits = lambda tm: _fused_vmem_bytes(tm, cp, hp, x_it, w_it) <= budget
        tm, num_tiles = _pick_row_tiling(M, tm_max, fits)
        mp = tm * num_tiles
        if mp != M:
            x2d = jnp.pad(x2d, ((0, mp - M), (0, 0)))

        def resident(r, c):
            return pl.BlockSpec((r, c), lambda i: (0, 0),
                                pipeline_mode=pl.Buffered(1))

        cost = pl.CostEstimate(
            flops=4 * mp * cp * hp,                         # two matmuls
            transcendentals=mp * hp + 2 * mp,               # sigmoid + 2 rsqrt
            bytes_accessed=(2 * cp * hp * w_it + 2 * mp * cp * x_it
                            + 6 * (hp + cp) * 4),
        )

        kern = functools.partial(_ffn_fused_kernel, h_valid=H, c_valid=C)
        out = pl.pallas_call(
            kern,
            out_shape=jax.ShapeDtypeStruct((mp, cp), x2d.dtype),
            grid_spec=pltpu.PrefetchScalarGridSpec(
                num_scalar_prefetch=0,
                grid=(num_tiles,),
                in_specs=[
                    pl.BlockSpec((tm, cp), lambda i: (i, 0)),   # x rows
                    resident(cp, hp),                           # w1
                    resident(1, hp), resident(1, hp), resident(1, hp),
                    resident(hp, cp),                           # w2
                    resident(1, cp), resident(1, cp), resident(1, cp),
                ],
                out_specs=pl.BlockSpec((tm, cp), lambda i: (i, 0)),
            ),
            compiler_params=pltpu.CompilerParams(
                dimension_semantics=("parallel",),
                vmem_limit_bytes=vmem_limit,
            ),
            cost_estimate=cost,
        )(x2d, w1, b1, g1, be1, w2, b2, g2, be2)
        return out[:M, :C]

    # =================== Streaming path (weights too large) =================
    h_dtype = x2d.dtype
    h_it = jnp.dtype(h_dtype).itemsize

    th = LANE
    if not force_stream:
        # Grow the H-chunk while the double-buffered weight tile stays small.
        while (th * 2 <= hp and hp % (th * 2) == 0
               and 2 * cp * (th * 2) * w_it <= int(0.35 * budget)):
            th *= 2
    kh = hp // th

    fits = lambda tm: _stream_vmem_bytes(tm, cp, hp, th, x_it, w_it, h_it) <= budget
    tm, num_tiles = _pick_row_tiling(M, tm_max, fits)
    mp = tm * num_tiles
    if mp != M:
        x2d = jnp.pad(x2d, ((0, mp - M), (0, 0)))

    cc = pltpu.CompilerParams(dimension_semantics=("parallel", "arbitrary"),
                              vmem_limit_bytes=vmem_limit)

    # Pass 1: fc1 over streamed w1 column chunks + per-row LN1 statistics.
    kern_a = functools.partial(_fc1_stream_kernel, h_valid=H)
    h_full, mu, rstd = pl.pallas_call(
        kern_a,
        out_shape=(jax.ShapeDtypeStruct((mp, hp), h_dtype),
                   jax.ShapeDtypeStruct((mp, 1), jnp.float32),
                   jax.ShapeDtypeStruct((mp, 1), jnp.float32)),
        grid_spec=pltpu.PrefetchScalarGridSpec(
            num_scalar_prefetch=0,
            grid=(num_tiles, kh),
            in_specs=[
                pl.BlockSpec((tm, cp), lambda i, k: (i, 0)),     # x rows
                pl.BlockSpec((cp, th), lambda i, k: (0, k)),     # w1 chunk
                pl.BlockSpec((1, th), lambda i, k: (0, k)),      # b1 chunk
            ],
            out_specs=[
                pl.BlockSpec((tm, th), lambda i, k: (i, k)),     # h chunk
                pl.BlockSpec((tm, 1), lambda i, k: (i, 0)),      # mu
                pl.BlockSpec((tm, 1), lambda i, k: (i, 0)),      # rstd
            ],
            scratch_shapes=[pltpu.VMEM((tm, 1), jnp.float32),
                            pltpu.VMEM((tm, 1), jnp.float32)],
        ),
        compiler_params=cc,
    )(x2d, w1, b1)

    # Pass 2: LN1 + SiLU per chunk, fc2 accumulation over streamed w2 rows,
    # then LN2 + residual.
    kern_b = functools.partial(_fc2_stream_kernel, c_valid=C)
    out = pl.pallas_call(
        kern_b,
        out_shape=jax.ShapeDtypeStruct((mp, cp), x2d.dtype),
        grid_spec=pltpu.PrefetchScalarGridSpec(
            num_scalar_prefetch=0,
            grid=(num_tiles, kh),
            in_specs=[
                pl.BlockSpec((tm, th), lambda i, k: (i, k)),     # h chunk
                pl.BlockSpec((tm, 1), lambda i, k: (i, 0)),      # mu
                pl.BlockSpec((tm, 1), lambda i, k: (i, 0)),      # rstd
                pl.BlockSpec((1, th), lambda i, k: (0, k)),      # ln1 gamma
                pl.BlockSpec((1, th), lambda i, k: (0, k)),      # ln1 beta
                pl.BlockSpec((th, cp), lambda i, k: (k, 0)),     # w2 chunk
                pl.BlockSpec((1, cp), lambda i, k: (0, 0),
                             pipeline_mode=pl.Buffered(1)),      # b2
                pl.BlockSpec((1, cp), lambda i, k: (0, 0),
                             pipeline_mode=pl.Buffered(1)),      # ln2 gamma
                pl.BlockSpec((1, cp), lambda i, k: (0, 0),
                             pipeline_mode=pl.Buffered(1)),      # ln2 beta
                pl.BlockSpec((tm, cp), lambda i, k: (i, 0)),     # x residual
            ],
            out_specs=pl.BlockSpec((tm, cp), lambda i, k: (i, 0)),
            scratch_shapes=[pltpu.VMEM((tm, cp), jnp.float32)],
        ),
        compiler_params=cc,
    )(h_full, mu, rstd, g1, be1, w2, b2, g2, be2, x2d)

    return out[:M, :C]


def ffn_forward(x, params, *, use_bf16_weights=True, force_stream=False):
    """x: (B, N, C).  params = (w1, b1, g1, be1, w2, b2, g2, be2) with the
    Linear weights pre-transposed to (in, out)."""
    w1, b1, g1, be1, w2, b2, g2, be2 = params
    if use_bf16_weights:
        # bf16 MXU operands (halved weight DMA/VMEM); f32 accumulation and
        # f32 LayerNorm statistics stay in-kernel.
        w1 = w1.astype(jnp.bfloat16)
        w2 = w2.astype(jnp.bfloat16)
    B, N, C = x.shape
    out = ffn_pallas(x.reshape(B * N, C), w1, b1, g1, be1, w2, b2, g2, be2,
                     force_stream=force_stream)
    return out.reshape(B, N, C)


# --------------------------------------------------------------------------
# Pure-JAX reference (PyTorch semantics)
# --------------------------------------------------------------------------
def _layernorm_ref(h, gamma, beta):
    mu = jnp.mean(h, axis=-1, keepdims=True)
    var = jnp.mean((h - mu) ** 2, axis=-1, keepdims=True)
    return (h - mu) * jax.lax.rsqrt(var + EPS) * gamma + beta


def ffn_reference(x, params):
    w1, b1, g1, be1, w2, b2, g2, be2 = params
    h = x @ w1 + b1
    h = _layernorm_ref(h, g1, be1)
    h = h * jax.nn.sigmoid(h)
    y = h @ w2 + b2
    y = _layernorm_ref(y, g2, be2)
    return y + x


# --------------------------------------------------------------------------
# Self-test
# --------------------------------------------------------------------------
if __name__ == "__main__":
    def make_params(key, c, h):
        kw1, kb1, kg1, kbe1, kw2, kb2, kg2, kbe2 = jax.random.split(key, 8)
        w1 = 0.02 * jax.random.normal(kw1, (c, h), jnp.float32)
        b1 = 0.02 * jax.random.normal(kb1, (1, h), jnp.float32)
        g1 = 1.0 + 0.01 * jax.random.normal(kg1, (1, h), jnp.float32)
        be1 = 0.01 * jax.random.normal(kbe1, (1, h), jnp.float32)
        w2 = 0.02 * jax.random.normal(kw2, (h, c), jnp.float32)
        b2 = 0.02 * jax.random.normal(kb2, (1, c), jnp.float32)
        g2 = 1.0 + 0.01 * jax.random.normal(kg2, (1, c), jnp.float32)
        be2 = 0.01 * jax.random.normal(kbe2, (1, c), jnp.float32)
        return (w1, b1, g1, be1, w2, b2, g2, be2)

    key = jax.random.PRNGKey(0)
    k0, k1, k2, k3 = jax.random.split(key, 4)

    # 1) Small module-sized shapes (C=32, H=64): exercises lane padding to 128.
    B, N, C, H = 2, 8, 32, 64
    x = jax.random.normal(k0, (B, N, C), jnp.float32)
    params = make_params(k1, C, H)
    ref = ffn_reference(x, params)

    out_f32 = jax.block_until_ready(ffn_forward(x, params, use_bf16_weights=False))
    assert out_f32.shape == x.shape
    assert jnp.allclose(out_f32, ref, atol=1e-5, rtol=1e-5), "f32 mismatch vs reference"

    out_bf16 = jax.block_until_ready(ffn_forward(x, params, use_bf16_weights=True))
    assert jnp.allclose(out_bf16, ref, atol=5e-2, rtol=5e-2), "bf16 mismatch vs reference"

    # 2) Row-padding path: token count not a multiple of the row tile.
    x_odd = jax.random.normal(k2, (3, 5, C), jnp.float32)
    out_odd = jax.block_until_ready(ffn_forward(x_odd, params, use_bf16_weights=False))
    assert jnp.allclose(out_odd, ffn_reference(x_odd, params), atol=1e-5, rtol=1e-5), \
        "padded-M mismatch vs reference"

    # 3) Lane-dense, multi-row-tile shapes (C=128, H=256, 544 tokens):
    #    exercises the multi-program "parallel" row axis.
    B2, N2, C2, H2 = 4, 136, 128, 256
    x2 = jax.random.normal(k3, (B2, N2, C2), jnp.float32)
    params2 = make_params(k1, C2, H2)
    ref2 = ffn_reference(x2, params2)
    out2 = jax.block_until_ready(ffn_forward(x2, params2, use_bf16_weights=False))
    assert jnp.allclose(out2, ref2, atol=1e-4, rtol=1e-4), "multi-tile mismatch"

    # 4) Weight-streaming fallback (forced): weights streamed in 128-wide
    #    H-chunks with an f32 accumulator -- the path large C/H take on v7x.
    out2s = jax.block_until_ready(
        ffn_forward(x2, params2, use_bf16_weights=False, force_stream=True))
    assert jnp.allclose(out2s, ref2, atol=1e-4, rtol=1e-4), "streamed mismatch"

    print("KERNEL_OK")
</pallas_src>

<mosaic_0001>
module attributes {stable_mosaic.version = 11 : i64} {
  func.func @_ffn_fused_kernel(%arg0: i32, %arg1: memref<8x128xf32, #tpu.memory_space<vmem>>, %arg2: memref<128x128xf32, #tpu.memory_space<vmem>>, %arg3: memref<1x128xf32, #tpu.memory_space<vmem>>, %arg4: memref<1x128xf32, #tpu.memory_space<vmem>>, %arg5: memref<1x128xf32, #tpu.memory_space<vmem>>, %arg6: memref<128x128xf32, #tpu.memory_space<vmem>>, %arg7: memref<1x128xf32, #tpu.memory_space<vmem>>, %arg8: memref<1x128xf32, #tpu.memory_space<vmem>>, %arg9: memref<1x128xf32, #tpu.memory_space<vmem>>, %arg10: memref<8x128xf32, #tpu.memory_space<vmem>>) attributes {dimension_semantics = [#tpu.dimension_semantics<parallel>], iteration_bounds = array<i64: 2>, scalar_prefetch = 0 : i64, scratch_operands = 0 : i64, tpu.core_type = #tpu.core_type<tc>, window_params = [{transform_indices = @transform_0, window_bounds = array<i64: 8, 128>}, {pipeline_mode = #tpu.pipeline_mode<synchronous>, transform_indices = @transform_1, window_bounds = array<i64: 128, 128>}, {pipeline_mode = #tpu.pipeline_mode<synchronous>, transform_indices = @transform_2, window_bounds = array<i64: 1, 128>}, {pipeline_mode = #tpu.pipeline_mode<synchronous>, transform_indices = @transform_3, window_bounds = array<i64: 1, 128>}, {pipeline_mode = #tpu.pipeline_mode<synchronous>, transform_indices = @transform_4, window_bounds = array<i64: 1, 128>}, {pipeline_mode = #tpu.pipeline_mode<synchronous>, transform_indices = @transform_5, window_bounds = array<i64: 128, 128>}, {pipeline_mode = #tpu.pipeline_mode<synchronous>, transform_indices = @transform_6, window_bounds = array<i64: 1, 128>}, {pipeline_mode = #tpu.pipeline_mode<synchronous>, transform_indices = @transform_7, window_bounds = array<i64: 1, 128>}, {pipeline_mode = #tpu.pipeline_mode<synchronous>, transform_indices = @transform_8, window_bounds = array<i64: 1, 128>}, {transform_indices = @transform_9, window_bounds = array<i64: 8, 128>}]} {
    %c0 = arith.constant 0 : index
    %c0_0 = arith.constant 0 : index
    %0 = vector.load %arg1[%c0, %c0_0] : memref<8x128xf32, #tpu.memory_space<vmem>>, vector<8x128xf32>
    %c0_1 = arith.constant 0 : index
    %c0_2 = arith.constant 0 : index
    %1 = vector.load %arg1[%c0_1, %c0_2] : memref<8x128xf32, #tpu.memory_space<vmem>>, vector<8x128xf32>
    %c0_3 = arith.constant 0 : index
    %c0_4 = arith.constant 0 : index
    %2 = vector.load %arg2[%c0_3, %c0_4] : memref<128x128xf32, #tpu.memory_space<vmem>>, vector<128x128xf32>
    %cst = arith.constant dense<0.000000e+00> : vector<8x128xf32>
    %3 = tpu.matmul %1, %2, %cst {dimension_numbers = #tpu.dot_dimension_numbers<[1], [0], [0], [1], [0, 0, 1, 1], [], []>} : vector<8x128xf32>, vector<128x128xf32>, vector<8x128xf32> -> vector<8x128xf32>
    %c0_5 = arith.constant 0 : index
    %c0_6 = arith.constant 0 : index
    %4 = vector.load %arg3[%c0_5, %c0_6] : memref<1x128xf32, #tpu.memory_space<vmem>>, vector<1x128xf32>
    %5 = vector.broadcast %4 : vector<1x128xf32> to vector<8x128xf32>
    %6 = arith.addf %3, %5 : vector<8x128xf32>
    %c0_7 = arith.constant 0 : index
    %c0_8 = arith.constant 0 : index
    %7 = vector.load %arg4[%c0_7, %c0_8] : memref<1x128xf32, #tpu.memory_space<vmem>>, vector<1x128xf32>
    %c0_9 = arith.constant 0 : index
    %c0_10 = arith.constant 0 : index
    %8 = vector.load %arg5[%c0_9, %c0_10] : memref<1x128xf32, #tpu.memory_space<vmem>>, vector<1x128xf32>
    %cst_11 = arith.constant dense<0.000000e+00> : vector<8xf32>
    %9 = vector.multi_reduction <add>, %6, %cst_11 [1] : vector<8x128xf32> to vector<8xf32>
    %10 = vector.shape_cast %9 : vector<8xf32> to vector<8x1xf32>
    %cst_12 = arith.constant 1.562500e-02 : f32
    %11 = vector.broadcast %cst_12 : f32 to vector<8x1xf32>
    %12 = arith.mulf %10, %11 : vector<8x1xf32>
    %13 = vector.broadcast %12 : vector<8x1xf32> to vector<8x128xf32>
    %14 = arith.subf %6, %13 : vector<8x128xf32>
    %15 = tpu.iota {dimensions = array<i32: 1>} : vector<8x128xi32>
    %c64_i32 = arith.constant 64 : i32
    %16 = vector.broadcast %c64_i32 : i32 to vector<8x128xi32>
    %17 = arith.cmpi slt, %15, %16 : vector<8x128xi32>
    %cst_13 = arith.constant 0.000000e+00 : f32
    %18 = vector.broadcast %cst_13 : f32 to vector<8x128xf32>
    %19 = arith.select %17, %14, %18 : vector<8x128xi1>, vector<8x128xf32>
    %20 = arith.mulf %19, %19 : vector<8x128xf32>
    %cst_14 = arith.constant dense<0.000000e+00> : vector<8xf32>
    %21 = vector.multi_reduction <add>, %20, %cst_14 [1] : vector<8x128xf32> to vector<8xf32>
    %22 = vector.shape_cast %21 : vector<8xf32> to vector<8x1xf32>
    %cst_15 = arith.constant 1.562500e-02 : f32
    %23 = vector.broadcast %cst_15 : f32 to vector<8x1xf32>
    %24 = arith.mulf %22, %23 : vector<8x1xf32>
    %cst_16 = arith.constant 9.99999974E-6 : f32
    %25 = vector.broadcast %cst_16 : f32 to vector<8x1xf32>
    %26 = arith.addf %24, %25 : vector<8x1xf32>
    %27 = math.rsqrt %26 : vector<8x1xf32>
    %28 = vector.broadcast %27 : vector<8x1xf32> to vector<8x128xf32>
    %29 = arith.mulf %14, %28 : vector<8x128xf32>
    %30 = vector.broadcast %7 : vector<1x128xf32> to vector<8x128xf32>
    %31 = arith.mulf %29, %30 : vector<8x128xf32>
    %32 = vector.broadcast %8 : vector<1x128xf32> to vector<8x128xf32>
    %33 = arith.addf %31, %32 : vector<8x128xf32>
    %34 = arith.negf %33 : vector<8x128xf32>
    %35 = math.exp %34 : vector<8x128xf32>
    %cst_17 = arith.constant 1.000000e+00 : f32
    %36 = vector.broadcast %cst_17 : f32 to vector<8x128xf32>
    %37 = arith.addf %36, %35 : vector<8x128xf32>
    %38 = arith.divf %36, %37 : vector<8x128xf32>
    %39 = arith.mulf %33, %38 : vector<8x128xf32>
    %c0_18 = arith.constant 0 : index
    %c0_19 = arith.constant 0 : index
    %40 = vector.load %arg6[%c0_18, %c0_19] : memref<128x128xf32, #tpu.memory_space<vmem>>, vector<128x128xf32>
    %cst_20 = arith.constant dense<0.000000e+00> : vector<8x128xf32>
    %41 = tpu.matmul %39, %40, %cst_20 {dimension_numbers = #tpu.dot_dimension_numbers<[1], [0], [0], [1], [0, 0, 1, 1], [], []>} : vector<8x128xf32>, vector<128x128xf32>, vector<8x128xf32> -> vector<8x128xf32>
    %c0_21 = arith.constant 0 : index
    %c0_22 = arith.constant 0 : index
    %42 = vector.load %arg7[%c0_21, %c0_22] : memref<1x128xf32, #tpu.memory_space<vmem>>, vector<1x128xf32>
    %43 = vector.broadcast %42 : vector<1x128xf32> to vector<8x128xf32>
    %44 = arith.addf %41, %43 : vector<8x128xf32>
    %c0_23 = arith.constant 0 : index
    %c0_24 = arith.constant 0 : index
    %45 = vector.load %arg8[%c0_23, %c0_24] : memref<1x128xf32, #tpu.memory_space<vmem>>, vector<1x128xf32>
    %c0_25 = arith.constant 0 : index
    %c0_26 = arith.constant 0 : index
    %46 = vector.load %arg9[%c0_25, %c0_26] : memref<1x128xf32, #tpu.memory_space<vmem>>, vector<1x128xf32>
    %cst_27 = arith.constant dense<0.000000e+00> : vector<8xf32>
    %47 = vector.multi_reduction <add>, %44, %cst_27 [1] : vector<8x128xf32> to vector<8xf32>
    %48 = vector.shape_cast %47 : vector<8xf32> to vector<8x1xf32>
    %cst_28 = arith.constant 3.125000e-02 : f32
    %49 = vector.broadcast %cst_28 : f32 to vector<8x1xf32>
    %50 = arith.mulf %48, %49 : vector<8x1xf32>
    %51 = vector.broadcast %50 : vector<8x1xf32> to vector<8x128xf32>
    %52 = arith.subf %44, %51 : vector<8x128xf32>
    %53 = tpu.iota {dimensions = array<i32: 1>} : vector<8x128xi32>
    %c32_i32 = arith.constant 32 : i32
    %54 = vector.broadcast %c32_i32 : i32 to vector<8x128xi32>
    %55 = arith.cmpi slt, %53, %54 : vector<8x128xi32>
    %cst_29 = arith.constant 0.000000e+00 : f32
    %56 = vector.broadcast %cst_29 : f32 to vector<8x128xf32>
    %57 = arith.select %55, %52, %56 : vector<8x128xi1>, vector<8x128xf32>
    %58 = arith.mulf %57, %57 : vector<8x128xf32>
    %cst_30 = arith.constant dense<0.000000e+00> : vector<8xf32>
    %59 = vector.multi_reduction <add>, %58, %cst_30 [1] : vector<8x128xf32> to vector<8xf32>
    %60 = vector.shape_cast %59 : vector<8xf32> to vector<8x1xf32>
    %cst_31 = arith.constant 3.125000e-02 : f32
    %61 = vector.broadcast %cst_31 : f32 to vector<8x1xf32>
    %62 = arith.mulf %60, %61 : vector<8x1xf32>
    %cst_32 = arith.constant 9.99999974E-6 : f32
    %63 = vector.broadcast %cst_32 : f32 to vector<8x1xf32>
    %64 = arith.addf %62, %63 : vector<8x1xf32>
    %65 = math.rsqrt %64 : vector<8x1xf32>
    %66 = vector.broadcast %65 : vector<8x1xf32> to vector<8x128xf32>
    %67 = arith.mulf %52, %66 : vector<8x128xf32>
    %68 = vector.broadcast %45 : vector<1x128xf32> to vector<8x128xf32>
    %69 = arith.mulf %67, %68 : vector<8x128xf32>
    %70 = vector.broadcast %46 : vector<1x128xf32> to vector<8x128xf32>
    %71 = arith.addf %69, %70 : vector<8x128xf32>
    %72 = arith.addf %71, %0 : vector<8x128xf32>
    %c0_33 = arith.constant 0 : index
    %c0_34 = arith.constant 0 : index
    %73 = vector.load %arg10[%c0_33, %c0_34] : memref<8x128xf32, #tpu.memory_space<vmem>>, vector<8x128xf32>
    tpu.vector_store %arg10[%c0_33, %c0_34], %72 {strides = array<i32>} : memref<8x128xf32, #tpu.memory_space<vmem>>, vector<8x128xf32>,
    return
  }
  func.func @transform_0(%arg0: i32) -> (i32, i32) {
    %c0_i32 = arith.constant 0 : i32
    %c0_i32_0 = arith.constant 0 : i32
    return %arg0, %c0_i32 : i32, i32
  }
  func.func @transform_1(%arg0: i32) -> (i32, i32) {
    %c0_i32 = arith.constant 0 : i32
    %c0_i32_0 = arith.constant 0 : i32
    %c0_i32_1 = arith.constant 0 : i32
    return %c0_i32, %c0_i32_0 : i32, i32
  }
  func.func @transform_2(%arg0: i32) -> (i32, i32) {
    %c0_i32 = arith.constant 0 : i32
    %c0_i32_0 = arith.constant 0 : i32
    %c0_i32_1 = arith.constant 0 : i32
    return %c0_i32, %c0_i32_0 : i32, i32
  }
  func.func @transform_3(%arg0: i32) -> (i32, i32) {
    %c0_i32 = arith.constant 0 : i32
    %c0_i32_0 = arith.constant 0 : i32
    %c0_i32_1 = arith.constant 0 : i32
    return %c0_i32, %c0_i32_0 : i32, i32
  }
  func.func @transform_4(%arg0: i32) -> (i32, i32) {
    %c0_i32 = arith.constant 0 : i32
    %c0_i32_0 = arith.constant 0 : i32
    %c0_i32_1 = arith.constant 0 : i32
    return %c0_i32, %c0_i32_0 : i32, i32
  }
  func.func @transform_5(%arg0: i32) -> (i32, i32) {
    %c0_i32 = arith.constant 0 : i32
    %c0_i32_0 = arith.constant 0 : i32
    %c0_i32_1 = arith.constant 0 : i32
    return %c0_i32, %c0_i32_0 : i32, i32
  }
  func.func @transform_6(%arg0: i32) -> (i32, i32) {
    %c0_i32 = arith.constant 0 : i32
    %c0_i32_0 = arith.constant 0 : i32
    %c0_i32_1 = arith.constant 0 : i32
    return %c0_i32, %c0_i32_0 : i32, i32
  }
  func.func @transform_7(%arg0: i32) -> (i32, i32) {
    %c0_i32 = arith.constant 0 : i32
    %c0_i32_0 = arith.constant 0 : i32
    %c0_i32_1 = arith.constant 0 : i32
    return %c0_i32, %c0_i32_0 : i32, i32
  }
  func.func @transform_8(%arg0: i32) -> (i32, i32) {
    %c0_i32 = arith.constant 0 : i32
    %c0_i32_0 = arith.constant 0 : i32
    %c0_i32_1 = arith.constant 0 : i32
    return %c0_i32, %c0_i32_0 : i32, i32
  }
  func.func @transform_9(%arg0: i32) -> (i32, i32) {
    %c0_i32 = arith.constant 0 : i32
    %c0_i32_0 = arith.constant 0 : i32
    return %arg0, %c0_i32 : i32, i32
  }
}

</mosaic_0001>

<bundles_post_ra>
// kernel: tpu_custom_call.1
= control target key start
LH: loop header
LB: loop body
LE: loop exit
PB: predicated region body
PF: predicated region fallthrough
CT: control target
= control target key end

     0   :  { %s1382_s0 = inlined_call_operand.hbm [shape: f32[16,128], index: 0, kind: input, shape index: {}]   ;;  %s1383_s1 = inlined_call_operand.hbm [shape: f32[128,128], index: 1, kind: input, shape index: {}]   ;;  %s1384_s2 = inlined_call_operand.vmem [shape: f32[1,128], index: 2, kind: input, shape index: {}]   ;;  %s1385_s3 = inlined_call_operand.vmem [shape: f32[1,128], index: 3, kind: input, shape index: {}]   ;;  %s1386_s4 = inlined_call_operand.vmem [shape: f32[1,128], index: 4, kind: input, shape index: {}]   ;;  %s1387_s5 = inlined_call_operand.hbm [shape: f32[128,128], index: 5, kind: input, shape index: {}]   ;;  %s1388_s6 = inlined_call_operand.vmem [shape: f32[1,128], index: 6, kind: input, shape index: {}]   ;;  %s1389_s7 = inlined_call_operand.vmem [shape: f32[1,128], index: 7, kind: input, shape index: {}]   ;;  %s1390_s8 = inlined_call_operand.vmem [shape: f32[1,128], index: 8, kind: input, shape index: {}]   ;;  %s1391_s9 = inlined_call_operand.hbm [shape: f32[16,128], index: 9, kind: output, shape index: {}]  }
   0x1   :  { %1397 = sst [smem:[#allocation14_spill]] %s1383_s1 }
   0x2   :  { %1398 = sst [smem:[#allocation15_spill]] %s1387_s5 }
   0x3   :  { %14 = vsyncpa [#allocation3], 0 }
   0x4   :  { %16 = vsyncpa [#allocation3 + $0x1], 0 }
   0x5   :  { %17 = vsyncpa [#allocation6], 0 }
   0x6   :  { %18 = vsyncpa [#allocation4], 0 }
   0x7   :  { %20 = vsyncpa [#allocation4 + $0x1], 0  ;;  %s1150_s30 = smov 0   ;;  %s1152_s10 = smov 0  }
   0x8   :  { %s1154_s11 = smov 0   ;;  %s1156_s12 = smov 0  }
   0x9 LB: > { %1399 = sst [smem:[#allocation12_spill]] %s1086_s11  ;;  %s1171_s13 = sadd.s32 4294967295, %s1090_s12   ;;  %s1090_s12 = sphi %s1156_s12, %s1421_s12   ;;  %s1086_s11 = sphi %s1154_s11, %s1418_s11   ;;  %s1082_s10 = sphi %s1152_s10, %s1420_s10   ;;  %s1078_s30 = sphi %s1150_s30, %s1419_s30  }
   0xa   : > { %s736_s14 = sadd.s32 4294967294, %s1090_s12   ;;  %p46_p0 = scmp.ne.s32.totalorder %s1082_s10, %s1078_s30 }
   0xb   : > { %p1392_p1 = scmp.eq.s32.totalorder %s1171_s13, 0  ;;  %p244_p3 = scmp.eq.s32.totalorder %s736_s14, 1 }
   0xc   : > { %p737_p5 = scmp.ge.s32.totalorder %s1090_s12, 1  ;;  %p251_p7 = scmp.lt.s32.totalorder %s1090_s12, 3 }
   0xd   : > { %p1180_p4 = por %p1392_p1, %p46_p0  ;;  %p1185_p6 = por %p244_p3, %p46_p0 }
   0xe   : > { %p1190_p8 = pnand %p737_p5, %p251_p7  ;;  %s1092_s18 = smov [#allocation5]  }
   0xf   : > { %s1400_s15 = scalar_select %p1180_p4, 1, 0 }
  0x10   : > { %s1401_s16 = scalar_select %p1185_p6, 1, 0 }
  0x11   : > { %s1402_s17 = scalar_select %p1190_p8, 1, 0 }
  0x12   : > { %s263_s19 = sshll.u32 %s1092_s18, 4  ;;  %p875_p9 = pneg %p1190_p8  ;;  %s264_s19 = int_to_ptr.vmem [resolvable:$true] %s263_s19 }
  0x13   : > { %s1093_s21 = smov [#allocation7]   ;;  %s953_s23 = scalar_lea.vmem %s264_s19, 2048 }
  0x14   : > { %p1199_p11 = pnand %p875_p9, %p1392_p1  ;;  %s285_s22 = sshll.u32 %s1093_s21, 4  ;;  %s286_s22 = int_to_ptr.vmem [resolvable:$true] %s285_s22 }
  0x15   : > { %p954_p13 = scmp.ne.s32.totalorder %s264_s19, %s953_s23  ;;  %p961_p5 = scmp.lt.s32.totalorder %s264_s19, %s264_s19 }
  0x16   : > { %p944_p12 = pneg %p1199_p11  ;;  %p962_p7 = scmp.lt.s32.totalorder %s953_s23, %s953_s23 }
  0x18   : > { %p956_p0 = pnand %p954_p13, %p944_p12  ;;  %p963_p10 = por %p962_p7, %p961_p5 }
  0x1a   : > { %p957_p3 = pneg %p956_p0 }
  0x1c   : > { %p964_p9 = pnand %p963_p10, %p957_p3 }
  0x1e   : > { %967 = shalt.err (!%p964_p9)
}
  0x1f   : > { %s1094_s24 = smov 128   ;;  %s1095_s25 = smov 8  }
  0x20   : > { %s1404_s1 = sld [smem:[#allocation14_spill]]  ;;  %s979_s28 = scalar_lea.vmem %s286_s22, 2048 }
  0x21   : > { %p980_p1 = scmp.ne.s32.totalorder %s286_s22, %s979_s28  ;;  %p987_p2 = scmp.lt.s32.totalorder %s286_s22, %s286_s22 }
  0x22   : > { %p988_p6 = scmp.lt.s32.totalorder %s979_s28, %s979_s28 }
  0x23   : > { %p982_p13 = pnand %p980_p1, %p944_p12 }
  0x24   : > { %p989_p5 = por %p988_p6, %p987_p2 }
  0x25   : > { %p983_p0 = pneg %p982_p13 }
  0x26   : > { %878 = dma.hbm_to_vmem [thread:$0]  (!%p1199_p11), %s1404_s1, 2048, %s264_s19, [#allocation6], %s1094_s24, %s1094_s24, %s1095_s25  }
  0x27   : > { %p990_p10 = pnand %p989_p5, %p983_p0 }
  0x29   : > { %993 = shalt.err (!%p990_p10)
}
  0x2a   : > { %s1405_s5 = sld [smem:[#allocation15_spill]]  ;;  %s1222_s18 = sadd.s32 1, %s1090_s12  }
  0x2b   : > { %s33_s19 = sadd.s32 1, %s1086_s11  ;;  %s30_s20 = ssub.s32 %s1090_s12, %s1222_s18 }
  0x2c   : > { %p40_p1 = scmp.ne.s32.totalorder %s1086_s11, %s1082_s10  ;;  %p31_p2 = scmp.eq.s32.totalorder %s30_s20, 0 }
  0x2d   : > { %p41_p6 = scmp.eq.s32.totalorder %s1090_s12, 0  ;;  %p1406_p12 = scmp.eq.s32.totalorder %s1171_s13, 1 }
  0x2e   : > { %p892_p7 = scmp.lt.s32.totalorder %s1090_s12, 2  ;;  %s308_s26 = sand.u32 1, %s1086_s11  }
  0x2f   : > { %p1232_p3 = por %p1406_p12, %p40_p1  ;;  %p42_p9 = por %p41_p6, %p40_p1 }
  0x30   : > { %881 = dma.hbm_to_vmem [thread:$0]  (!%p1199_p11), %s1405_s5, 2048, %s286_s22, [#allocation6], %s1094_s24, %s1094_s24, %s1095_s25  }
  0x31   : > { %s1407_s21 = scalar_select %p1232_p3, 1, 0 }
  0x32   : > { %s1238_s23 = scalar_select %p31_p2, %s1086_s11, %s33_s19  }
  0x33   : > { %s741_s27 = sshll.u32 %s308_s26, 3  ;;  %s742_s22 = sshll.u32 %s1090_s12, 7 }
  0x34   : > { %1408 = sst [smem:[#allocation13_spill]] %s1238_s23  ;;  %s1245_s28 = scalar_lea.hbm %s1382_s0, %s742_s22 }
  0x35   : > { %s312_s29 = scalar_lea.vmem [#allocation2], %s741_s27  ;;  %p1247_p11 = pnand %p892_p7, %p42_p9 }
  0x36   : > { %s319_s14 = sshll.u32 %s312_s29, 4  ;;  %s309_s19 = scalar_lea.sflag [#allocation3], %s308_s26  ;;  %s320_s14 = int_to_ptr.vmem [resolvable:$true] %s319_s14 }
  0x37   : > { %s994_s1 = scalar_lea.hbm %s1245_s28, 128  ;;  %p996_p0 = pneg %p1247_p11 }
  0x38   : > { %p995_p13 = scmp.ne.s32.totalorder %s1245_s28, %s994_s1  ;;  %s999_s25 = scalar_lea.hbm %s1382_s0, 256 }
  0x39   : > { %p1000_p1 = scmp.lt.s32.totalorder %s1245_s28, %s1382_s0  ;;  %p1001_p2 = scmp.lt.s32.totalorder %s999_s25, %s994_s1 }
  0x3a   : > { %p997_p5 = pnand %p996_p0, %p995_p13 }
  0x3b   : > { %p1002_p6 = por %p1001_p2, %p1000_p1 }
  0x3c   : > { %p998_p10 = pneg %p997_p5 }
  0x3e   : > { %p1003_p12 = pnand %p1002_p6, %p998_p10 }
  0x40   : > { %1006 = shalt.err (!%p1003_p12)
}
  0x41   : > { %s1007_s29 = scalar_lea.vmem %s320_s14, 128  ;;  %s1096_s26 = smov [#allocation2]  }
  0x42   : > { %p1008_p7 = scmp.ne.s32.totalorder %s320_s14, %s1007_s29  ;;  %s1012_s23 = sshll.u32 %s1096_s26, 4  ;;  %s1013_s23 = int_to_ptr.vmem [resolvable:$false] %s1012_s23 }
  0x43   : > { %s1014_s11 = scalar_lea.vmem %s1013_s23, 256  ;;  %p1015_p13 = scmp.lt.s32.totalorder %s320_s14, %s1013_s23 }
  0x44   : > { %p1010_p9 = pnand %p1008_p7, %p996_p0  ;;  %p1016_p5 = scmp.lt.s32.totalorder %s1014_s11, %s1007_s29 }
  0x46   : > { %p1011_p3 = pneg %p1010_p9  ;;  %p1017_p4 = por %p1016_p5, %p1015_p13 }
  0x48   : > { %p1018_p8 = pnand %p1017_p4, %p1011_p3 }
  0x4a   : > { %1021 = shalt.err (!%p1018_p8)
}
  0x4b   : > { %885 = dma.hbm_to_vmem [thread:$0]  (!%p1247_p11), %s1245_s28, 128, %s320_s14, %s309_s19  }
  0x4c   : > { %p1410_p10 = scmp.ne.s32.totalorder %s1402_s17, 0 }
  0x4d   : > { %s1268_s1 = sand.u32 (!%p1410_p10), 1, %s1082_s10   ;;  %p1411_p4 = scmp.ne.s32.totalorder (!%p1410_p10), %s1400_s15, 0 }
  0x4e   : > { %328 = sbr.rel (%p1410_p10) target bundleno = 1174 (0x496), region = 56  ;;  %s744_s5 = sshll.u32 (!%p1410_p10), %s1268_s1, 3 }
  0x4f   : > { %s331_s23 = scalar_lea.sflag (!%p1410_p10), [#allocation3], %s1268_s1  ;;  %s1274_s11 = scalar_lea.vmem (!%p1410_p10), [#allocation2], %s744_s5 }
  0x53   : > { %1065 = dma.done.wait (%p1411_p4), %s331_s23, 128  }
  0x54   : > { %1067 = vsyncadd (%p1411_p4), %s331_s23, 4294967168  ;;  %p1412_p8 = scmp.eq.s32.totalorder %s1171_s13, 0 }
  0x56   : > { %1069 = dma.done.wait (%p1412_p8), [#allocation6], 4096   ;;  %p1413_p3 = pmov %p1412_p8 }
  0x57   : > { %v1097_v0 = vmov 0.0   ;;  %vm1098_vm0 = vmmov 0   ;;  %v393_v1 = vld [vmem:[#allocation5 + $0x78] sm:$0xff]  ;;  %v392_v2 = vld [vmem:[#allocation5 + $0x70] sm:$0xff]  ;;  %v391_v3 = vld [vmem:[#allocation5 + $0x68] sm:$0xff]  ;;  %v477_v22 = vlaneseq  ;;  %s756_s23 = sshll.u32 %s1171_s13, 7 }
  0x58   : > { %1071 = vsyncadd (%p1413_p3), [#allocation6], 4294963200  ;;  %793 = vmatprep.subr.mxu0 %v1097_v0  ;;  %825 = vmatprep.mubr.msk.f32.mxu0 %vm1098_vm0, %v1097_v0  ;;  %v390_v4 = vld [vmem:[#allocation5 + $0x60] sm:$0xff]  ;;  %v389_v5 = vld [vmem:[#allocation5 + $0x58] sm:$0xff]  ;;  %s645_s14 = scalar_lea.hbm %s1391_s9, %s756_s23  ;;  %s634_s20 = scalar_lea.sflag [#allocation4], %s1268_s1 }
  0x59   : > { %828 = vmatprep.subr.mxu1 %v1097_v0  ;;  %860 = vmatprep.mubr.msk.f32.mxu1 %vm1098_vm0, %v1097_v0  ;;  %v388_v6 = vld [vmem:[#allocation5 + $0x50] sm:$0xff]  ;;  %v387_v7 = vld [vmem:[#allocation5 + $0x48] sm:$0xff]  ;;  %v386_v8 = vld [vmem:[#allocation5 + $0x40] sm:$0xff]  ;;  %v1310_v23 = vand.u32 127, %v477_v22  ;;  %p1414_p0 = scmp.ne.s32.totalorder %s1407_s21, 0  ;;  %s1099_s22 = smov [#allocation8]  }
  0x5a   : > { %794 = vmatpush3.msra.mxu0 %v393_v1  ;;  %v385_v9 = vld [vmem:[#allocation5 + $0x38] sm:$0xff]  ;;  %v384_v10 = vld [vmem:[#allocation5 + $0x30] sm:$0xff]  ;;  %v383_v11 = vld [vmem:[#allocation5 + $0x28] sm:$0xff]  ;;  %s1026_s13 = sshll.u32 %s1099_s22, 4  ;;  %s1027_s13 = int_to_ptr.vmem [resolvable:$false] %s1026_s13 }
  0x5b   : > { %795 = vmatprep.subr.mxu0 %v1097_v0  ;;  %v382_v12 = vld [vmem:[#allocation5 + $0x20] sm:$0xff]  ;;  %v381_v13 = vld [vmem:[#allocation5 + $0x18] sm:$0xff]  ;;  %v380_v14 = vld [vmem:[#allocation5 + $0x10] sm:$0xff]  ;;  %vm479_vm1 = vcmp.lt.s32.totalorder %v1310_v23, 64  ;;  %vm608_vm2 = vcmp.lt.s32.totalorder %v1310_v23, 32 }
  0x5c   : > { %796 = vmatpush3.msra.mxu0 %v392_v2  ;;  %v379_v15 = vld [vmem:[#allocation5 + $0x8] sm:$0xff]  ;;  %v378_v16 = vld [vmem:[#allocation5] sm:$0xff]  ;;  %v1303_v17 = vld [vmem:[%s1274_s11] sm:$0xff]  ;;  %s376_s11 = scalar_lea.vmem [#allocation8], %s744_s5  ;;  %s1028_s5 = scalar_lea.vmem %s1027_s13, 256 }
  0x5d   : > { %797 = vmatprep.subr.mxu0 %v1097_v0  ;;  %v748_v18 = vld [vmem:[%s1384_s2] ss:$0 sm:$0xff]  ;;  %v524_v29 = vld [vmem:[#allocation7 + $0x78] sm:$0xff]  ;;  %v522_v31 = vld [vmem:[#allocation7 + $0x68] sm:$0xff]  ;;  %s647_s15 = sshll.u32 %s376_s11, 4  ;;  %s648_s15 = int_to_ptr.vmem [resolvable:$true] %s647_s15 }
  0x5e   : > { %798 = vmatpush3.msra.mxu0 %v391_v3  ;;  %v523_v30 = vld [vmem:[#allocation7 + $0x70] sm:$0xff]  ;;  %829 = vmatpush3.msra.mxu1 %v524_v29  ;;  %v521_v32 = vld [vmem:[#allocation7 + $0x60] sm:$0xff]  ;;  %v520_v33 = vld [vmem:[#allocation7 + $0x58] sm:$0xff]  ;;  %s1022_s19 = scalar_lea.vmem %s648_s15, 128  ;;  %p1029_p6 = scmp.lt.s32.totalorder %s648_s15, %s1027_s13 }
  0x5f   : > { %799 = vmatprep.subr.mxu0 %v1097_v0  ;;  %830 = vmatprep.subr.mxu1 %v1097_v0  ;;  %v519_v34 = vld [vmem:[#allocation7 + $0x50] sm:$0xff]  ;;  %v518_v35 = vld [vmem:[#allocation7 + $0x48] sm:$0xff]  ;;  %v517_v36 = vld [vmem:[#allocation7 + $0x40] sm:$0xff]  ;;  %p1023_p11 = scmp.ne.s32.totalorder %s648_s15, %s1022_s19  ;;  %p1030_p12 = scmp.lt.s32.totalorder %s1028_s5, %s1022_s19 }
  0x60   : > { %800 = vmatpush3.msra.mxu0 %v390_v4  ;;  %831 = vmatpush3.msra.mxu1 %v523_v30  ;;  %v516_v37 = vld [vmem:[#allocation7 + $0x38] sm:$0xff]  ;;  %v515_v38 = vld [vmem:[#allocation7 + $0x30] sm:$0xff]  ;;  %v514_v39 = vld [vmem:[#allocation7 + $0x28] sm:$0xff] }
  0x61   : > { %801 = vmatprep.subr.mxu0 %v1097_v0  ;;  %832 = vmatprep.subr.mxu1 %v1097_v0  ;;  %v513_v40 = vld [vmem:[#allocation7 + $0x20] sm:$0xff]  ;;  %v512_v41 = vld [vmem:[#allocation7 + $0x18] sm:$0xff]  ;;  %v511_v42 = vld [vmem:[#allocation7 + $0x10] sm:$0xff]  ;;  %p1024_p1 = pnand %p1023_p11, %p1414_p0  ;;  %p1031_p7 = por %p1030_p12, %p1029_p6 }
  0x62   : > { %802 = vmatpush3.msra.mxu0 %v389_v5  ;;  %833 = vmatpush3.msra.mxu1 %v522_v31  ;;  %v510_v43 = vld [vmem:[#allocation7 + $0x8] sm:$0xff]  ;;  %v509_v44 = vld [vmem:[#allocation7] sm:$0xff]  ;;  %v749_v49 = vld [vmem:[%s1385_s3] ss:$0 sm:$0xff] }
  0x63   : > { %803 = vmatprep.subr.mxu0 %v1097_v0  ;;  %834 = vmatprep.subr.mxu1 %v1097_v0  ;;  %v750_v51 = vld [vmem:[%s1386_s4] ss:$0 sm:$0xff]  ;;  %p1025_p2 = pneg %p1024_p1 }
  0x64   : > { %804 = vmatpush3.msra.mxu0 %v388_v6  ;;  %835 = vmatpush3.msra.mxu1 %v521_v32  ;;  %v752_v59 = vld [vmem:[%s1388_s6] ss:$0 sm:$0xff] }
  0x65   : > { %805 = vmatprep.subr.mxu0 %v1097_v0  ;;  %836 = vmatprep.subr.mxu1 %v1097_v0  ;;  %p1032_p9 = pnand %p1031_p7, %p1025_p2 }
  0x66   : > { %806 = vmatpush3.msra.mxu0 %v387_v7  ;;  %837 = vmatpush3.msra.mxu1 %v520_v33 }
  0x67   : > { %807 = vmatprep.subr.mxu0 %v1097_v0  ;;  %838 = vmatprep.subr.mxu1 %v1097_v0 }
  0x68   : > { %808 = vmatpush3.msra.mxu0 %v386_v8  ;;  %839 = vmatpush3.msra.mxu1 %v519_v34  ;;  %v753_v8 = vld [vmem:[%s1389_s7] ss:$0 sm:$0xff] }
  0x69   : > { %809 = vmatprep.subr.mxu0 %v1097_v0  ;;  %840 = vmatprep.subr.mxu1 %v1097_v0 }
  0x6a   : > { %810 = vmatpush3.msra.mxu0 %v385_v9  ;;  %841 = vmatpush3.msra.mxu1 %v518_v35 }
  0x6b   : > { %811 = vmatprep.subr.mxu0 %v1097_v0  ;;  %842 = vmatprep.subr.mxu1 %v1097_v0 }
  0x6c   : > { %812 = vmatpush3.msra.mxu0 %v384_v10  ;;  %843 = vmatpush3.msra.mxu1 %v517_v36  ;;  %v754_v10 = vld [vmem:[%s1390_s8] ss:$0 sm:$0xff] }
  0x6d   : > { %813 = vmatprep.subr.mxu0 %v1097_v0  ;;  %844 = vmatprep.subr.mxu1 %v1097_v0 }
  0x6e   : > { %814 = vmatpush3.msra.mxu0 %v383_v11  ;;  %845 = vmatpush3.msra.mxu1 %v516_v37 }
  0x6f   : > { %815 = vmatprep.subr.mxu0 %v1097_v0  ;;  %846 = vmatprep.subr.mxu1 %v1097_v0 }
  0x70   : > { %816 = vmatpush3.msra.mxu0 %v382_v12  ;;  %847 = vmatpush3.msra.mxu1 %v515_v38 }
  0x71   : > { %817 = vmatprep.subr.mxu0 %v1097_v0  ;;  %848 = vmatprep.subr.mxu1 %v1097_v0 }
  0x72   : > { %818 = vmatpush3.msra.mxu0 %v381_v13  ;;  %849 = vmatpush3.msra.mxu1 %v514_v39 }
  0x73   : > { %819 = vmatprep.subr.mxu0 %v1097_v0  ;;  %850 = vmatprep.subr.mxu1 %v1097_v0 }
  0x74   : > { %820 = vmatpush3.msra.mxu0 %v380_v14  ;;  %851 = vmatpush3.msra.mxu1 %v513_v40 }
  0x75   : > { %821 = vmatprep.subr.mxu0 %v1097_v0  ;;  %852 = vmatprep.subr.mxu1 %v1097_v0 }
  0x76   : > { %822 = vmatpush3.msra.mxu0 %v379_v15  ;;  %853 = vmatpush3.msra.mxu1 %v512_v41 }
  0x77   : > { %823 = vmatprep.subr.mxu0 %v1097_v0  ;;  %854 = vmatprep.subr.mxu1 %v1097_v0 }
  0x78   : > { %824 = vmatpush3.msra.mxu0 %v378_v16  ;;  %855 = vmatpush3.msra.mxu1 %v511_v42 }
  0x79   : > { %826 = vmatmul.mubr.f32.vlgmr.msra.gmra.mxu0 %v1303_v17  ;;  %856 = vmatprep.subr.mxu1 %v1097_v0 }
  0x7a   : > { %857 = vmatpush3.msra.mxu1 %v510_v43 }
  0x7b   : > { %858 = vmatprep.subr.mxu1 %v1097_v0 }
  0x7c   : > { %859 = vmatpush3.msra.mxu1 %v509_v44 }
 0x139   : > { %v467_v19 = vpop.f32.mrf.mxu0 }
 0x13a   : > { %v468_v20 = vadd.f32 %v748_v18, %v467_v19 }
 0x13b   : > { %v827_v21 = vpop.f32.mrf.mxu0 }
 0x13c   : > { %473 = vadd.xlane.f32.xlu0 %v468_v20 }
 0x1c5   : > { %v474_v24 = vpop.xlane.xlu0 %473 }
 0x1c6   : > { %v475_v25 = vmul.f32 0.015625, %v474_v24 }
 0x1c8   : > { %v476_v26 = vsub.f32 %v468_v20, %v475_v25 }
 0x1ca   : > { %v480_v27 = vsel %vm479_vm1, %v476_v26, 0.0 }
 0x1cb   : > { %v481_v28 = vmul.f32 %v480_v27, %v480_v27 }
 0x1cd   : > { %482 = vadd.xlane.f32.xlu0 %v481_v28 }
 0x256   : > { %v483_v45 = vpop.xlane.xlu0 %482 }
 0x257   : > { %v484_v46 = vmul.f32 0.015625, %v483_v45 }
 0x259   : > { %v485_v47 = vadd.f32 1e-05, %v484_v46 }
 0x25b   : > { %934 = vrsqrt.f32 %v485_v47 }
 0x268   : > { %v935_v48 = vpop.eup %934 }
 0x269   : > { %v487_v50 = vmul.f32 %v935_v48, %v476_v26 }
 0x26b   : > { %v494_v52 = vmul.f32 %v749_v49, %v487_v50 }
 0x26d   : > { %v501_v53 = vadd.f32 %v750_v51, %v494_v52 }
 0x26f   : > { %v751_v54 = vmul.f32 -1.442695, %v501_v53 }
 0x271   : > { %936 = vpow2.f32 %v751_v54 }
 0x27e   : > { %v937_v55 = vpop.eup %936 }
 0x27f   : > { %v505_v56 = vadd.f32 1.0, %v937_v55 }
 0x281   : > { %938 = vrcp.f32 %v505_v56 }
 0x28e   : > { %v939_v57 = vpop.eup %938 }
 0x28f   : > { %v508_v58 = vmul.f32 %v939_v57, %v501_v53 }
 0x291   : > { %861 = vmatmul.mubr.f32.vlgmr.msra.gmra.mxu1 %v508_v58 }
 0x351   : > { %v598_v60 = vpop.f32.mrf.mxu1 }
 0x352   : > { %v599_v61 = vadd.f32 %v752_v59, %v598_v60 }
 0x353   : > { %v862_v62 = vpop.f32.mrf.mxu1 }
 0x354   : > { %604 = vadd.xlane.f32.xlu1 %v599_v61 }
 0x3dd   : > { %v605_v63 = vpop.xlane.xlu1 %604 }
 0x3de   : > { %v606_v0 = vmul.f32 0.03125, %v605_v63 }
 0x3e0   : > { %v607_v1 = vsub.f32 %v599_v61, %v606_v0 }
 0x3e2   : > { %v609_v2 = vsel %vm608_vm2, %v607_v1, 0.0 }
 0x3e3   : > { %v610_v3 = vmul.f32 %v609_v2, %v609_v2 }
 0x3e5   : > { %611 = vadd.xlane.f32.xlu1 %v610_v3 }
 0x46e   : > { %v612_v4 = vpop.xlane.xlu1 %611 }
 0x46f   : > { %v613_v5 = vmul.f32 0.03125, %v612_v4 }
 0x471   : > { %v614_v6 = vadd.f32 1e-05, %v613_v5 }
 0x473   : > { %940 = vrsqrt.f32 %v614_v6 }
 0x480   : > { %v941_v7 = vpop.eup %940 }
 0x481   : > { %v616_v9 = vmul.f32 %v941_v7, %v607_v1 }
 0x483   : > { %v623_v11 = vmul.f32 %v753_v8, %v616_v9 }
 0x485   : > { %v630_v12 = vadd.f32 %v754_v10, %v623_v11 }
 0x487   : > { %v631_v13 = vadd.f32 %v630_v12, %v1303_v17 }
 0x489   : > { %632 = vst [vmem:[%s376_s11] sm:$0xff] %v631_v13 }
 0x48a   : > { %1035 = shalt.err (!%p1032_p9)
}
 0x48b   : > { %s1036_s24 = scalar_lea.hbm %s645_s14, 128  ;;  %s1040_s27 = scalar_lea.hbm %s1391_s9, 256 }
 0x48c   : > { %p1037_p13 = scmp.ne.s32.totalorder %s645_s14, %s1036_s24  ;;  %p1041_p4 = scmp.lt.s32.totalorder %s645_s14, %s1391_s9 }
 0x48d   : > { %p1042_p8 = scmp.lt.s32.totalorder %s1040_s27, %s1036_s24 }
 0x48e   : > { %p1038_p5 = pnand %p1037_p13, %p1414_p0 }
 0x48f   : > { %p1043_p3 = por %p1042_p8, %p1041_p4 }
 0x490   : > { %p1039_p10 = pneg %p1038_p5 }
 0x492   : > { %p1044_p11 = pnand %p1043_p3, %p1039_p10 }
 0x494   : > { %1047 = shalt.err (!%p1044_p11)
}
 0x495   : > { %873 = dma.vmem_to_hbm [thread:$0]  (%p1414_p0), %s648_s15, 128, %s645_s14, %s634_s20  }
 0x496 PF: > { %s659_s23 = sand.u32 1, %s1078_s30   ;;  %p1415_p1 = scmp.ne.s32.totalorder %s1401_s16, 0 }
 0x497   : > { %p1416_p2 = scmp.ge.s32.totalorder %s1090_s12, 2  ;;  %s660_s11 = scalar_lea.sflag [#allocation4], %s659_s23 }
 0x499   : > { %p887_p6 = pnand %p1416_p2, %p1415_p1 }
 0x49b   : > { %p888_p12 = pneg %p887_p6 }
 0x49d   : > { %1073 = dma.done.wait (%p888_p12), %s660_s11, 128  }
 0x49e   : > { %1075 = vsyncadd (%p888_p12), %s660_s11, 4294967168  ;;  %s1417_s17 = sld [smem:[#allocation12_spill]]  ;;  %p23_p7 = scmp.ge.s32.totalorder %s1222_s18, 4  }
 0x49f   : > { %s1418_s11 = sld [smem:[#allocation13_spill]]  ;;  %s1419_s30 = smov %s1082_s10 }
 0x4a0   : > { %s1421_s12 = smov %s1222_s18  ;;  %25 = sbr.rel (!%p23_p7) target bundleno = 9 (0x9), region = 109 }
 0x4a4   : > { %s1420_s10 = smov %s1417_s17 }
 0x4a5   :  { %665 = vsyncpa [#allocation3], 1 }
 0x4a6   :  { %667 = vsyncpa [#allocation3 + $0x1], 1 }
 0x4a7   :  { %668 = vsyncpa [#allocation6], 1 }
 0x4a8   :  { %669 = vsyncpa [#allocation4], 1 }
 0x4a9   :  { %671 = vsyncpa [#allocation4 + $0x1], 1 }

</bundles_post_ra>
